<compile_context>
chip_gen: v5e
topology: v5e:2x2
jax: 0.10.0
libtpu: 0.0.40
codegen_flags: <defaults>
</compile_context>

<pallas_src>
import functools

import jax
import jax.numpy as jnp
from jax import lax
from jax.experimental import pallas as pl
from jax.experimental.pallas import tpu as pltpu

# ----------------------------- model config ---------------------------------
VOCAB = 64          # vocab size (synthetic)
T = 8               # context length (sequence)
D = 32              # transformer width
N_HEADS = 2         # attention heads
N_LAYERS = 2        # transformer layers
D_MLP = 4 * D       # MLP hidden width
EMBED_DIM = 32      # text_projection output dim
B = 2               # batch
EPS = 1e-5


def _layernorm(x, g, b):
    mu = jnp.mean(x, axis=-1, keepdims=True)
    var = jnp.mean((x - mu) * (x - mu), axis=-1, keepdims=True)
    return (x - mu) * lax.rsqrt(var + EPS) * g + b


# ----------------------------- fused kernel ---------------------------------
def encoder_kernel(eot_ref,                                   # scalar prefetch
                   x_ref,
                   ln1g_ref, ln1b_ref, wqkv_ref, bqkv_ref, wo_ref, bo_ref,
                   ln2g_ref, ln2b_ref, w1_ref, b1_ref, w2_ref, b2_ref,
                   lnfg_ref, lnfb_ref, proj_ref,
                   out_ref,
                   x_sc,                                      # VMEM scratch
                   *, n_heads):
    """Grid = (batch, layer).  One residual attention block per step; the
    activation lives in VMEM scratch across the layer axis.  On the last layer
    the final LN + EOT gather + text_projection are fused in."""
    # All program ids / scalar reads at TOP level (never inside pl.when).
    b = pl.program_id(0)
    layer = pl.program_id(1)
    n_layers = pl.num_programs(1)
    eot_pos = eot_ref[b]                                      # EOT position

    # Load the embedded tokens into the resident activation once per batch row.
    @pl.when(layer == 0)
    def _():
        x_sc[...] = x_ref[0]                                  # (T, D)

    x = x_sc[...]                                             # (T, D) f32
    Tt, Dd = x.shape
    Dh = Dd // n_heads

    # ---- attention branch (pre-LN, causal, head-batched) -------------------
    h = _layernorm(x, ln1g_ref[0], ln1b_ref[0])               # (T, D)
    # 1/sqrt(Dh) is already folded into the Q columns of wqkv/bqkv.
    qkv = jnp.dot(h, wqkv_ref[0],
                  preferred_element_type=jnp.float32) + bqkv_ref[0]  # (T, 3D)
    q = qkv[:, 0 * Dd:1 * Dd].reshape(Tt, n_heads, Dh)
    k = qkv[:, 1 * Dd:2 * Dd].reshape(Tt, n_heads, Dh)
    v = qkv[:, 2 * Dd:3 * Dd].reshape(Tt, n_heads, Dh)

    s = jnp.einsum('qhd,khd->hqk', q, k,
                   preferred_element_type=jnp.float32)        # (H, T, T)
    qi = lax.broadcasted_iota(jnp.int32, (Tt, Tt), 0)
    ki = lax.broadcasted_iota(jnp.int32, (Tt, Tt), 1)
    s = jnp.where((ki <= qi)[None, :, :], s, jnp.float32(-1e30))

    m = jnp.max(s, axis=-1, keepdims=True)
    p = jnp.exp(s - m)
    p = p / jnp.sum(p, axis=-1, keepdims=True)

    attn = jnp.einsum('hqk,khd->qhd', p, v,
                      preferred_element_type=jnp.float32).reshape(Tt, Dd)
    x = x + jnp.dot(attn, wo_ref[0],
                    preferred_element_type=jnp.float32) + bo_ref[0]

    # ---- MLP branch (QuickGELU, as used by CLIP) ----------------------------
    h2 = _layernorm(x, ln2g_ref[0], ln2b_ref[0])
    h2 = jnp.dot(h2, w1_ref[0],
                 preferred_element_type=jnp.float32) + b1_ref[0]
    h2 = h2 * jax.nn.sigmoid(1.702 * h2)
    x = x + jnp.dot(h2, w2_ref[0],
                    preferred_element_type=jnp.float32) + b2_ref[0]

    x_sc[...] = x                                             # stays in VMEM

    # ---- fused final LN + EOT pooling + text_projection ---------------------
    @pl.when(layer == n_layers - 1)
    def _():
        row = x_sc[pl.ds(eot_pos, 1), :]                      # (1, D) gather
        row = _layernorm(row, lnfg_ref[...], lnfb_ref[...])   # LN on 1 row only
        out_ref[0] = jnp.dot(row, proj_ref[...],
                             preferred_element_type=jnp.float32)   # (1, E)


# ----------------------------- wrapper ---------------------------------------
def _layer_spec(*trailing):
    """Per-layer stacked parameter (N_LAYERS, *trailing): block over layers."""
    zeros = (0,) * len(trailing)
    return pl.BlockSpec((1,) + tuple(trailing),
                        lambda b, l, eot: (l,) + zeros)


def _const_spec(*shape):
    """Small shared parameter, full-array block every step."""
    zeros = (0,) * len(shape)
    return pl.BlockSpec(tuple(shape), lambda b, l, eot: zeros)


def prepare_stacked(params):
    """Stack per-layer params on a leading layer axis; fold the attention
    scale 1/sqrt(Dh) into the Q columns of wqkv / bqkv."""
    layers = params['layers']
    st = lambda name: jnp.stack([lp[name] for lp in layers], axis=0)
    names = ('ln1_g', 'ln1_b', 'wqkv', 'bqkv', 'wo', 'bo',
             'ln2_g', 'ln2_b', 'w1', 'b1', 'w2', 'b2')
    stacked = {n: st(n) for n in names}
    scale = 1.0 / jnp.sqrt(jnp.float32(D // N_HEADS))
    col_scale = jnp.concatenate(
        [jnp.full((D,), scale, jnp.float32), jnp.ones((2 * D,), jnp.float32)])
    stacked['wqkv'] = stacked['wqkv'] * col_scale[None, None, :]
    stacked['bqkv'] = stacked['bqkv'] * col_scale[None, None, :]
    return stacked


def encode_text(tokens, params):
    Bb = tokens.shape[0]
    # Glue: embedding lookups + positional embedding + EOT index (argmax).
    x = (params['tok_emb'][tokens] + params['pos_emb'][None]).astype(jnp.float32)
    eot = jnp.argmax(tokens, axis=-1).astype(jnp.int32)       # (B,)

    sp = prepare_stacked(params)
    args = (x,
            sp['ln1_g'], sp['ln1_b'], sp['wqkv'], sp['bqkv'], sp['wo'],
            sp['bo'], sp['ln2_g'], sp['ln2_b'], sp['w1'], sp['b1'],
            sp['w2'], sp['b2'],
            params['lnf_g'], params['lnf_b'], params['text_proj'])

    in_specs = [
        pl.BlockSpec((1, T, D), lambda b, l, eot: (b, 0, 0)),   # x
        _layer_spec(1, D),           # ln1_g
        _layer_spec(1, D),           # ln1_b
        _layer_spec(D, 3 * D),       # wqkv (scale folded)
        _layer_spec(1, 3 * D),       # bqkv (scale folded)
        _layer_spec(D, D),           # wo
        _layer_spec(1, D),           # bo
        _layer_spec(1, D),           # ln2_g
        _layer_spec(1, D),           # ln2_b
        _layer_spec(D, D_MLP),       # w1
        _layer_spec(1, D_MLP),       # b1
        _layer_spec(D_MLP, D),       # w2
        _layer_spec(1, D),           # b2
        _const_spec(1, D),           # lnf_g
        _const_spec(1, D),           # lnf_b
        _const_spec(D, EMBED_DIM),   # text_projection
    ]

    per_layer_flops = (2 * T * D * 3 * D          # qkv proj
                       + 2 * 2 * T * T * D        # scores + PV
                       + 2 * T * D * D            # out proj
                       + 2 * 2 * T * D * D_MLP)   # MLP
    flops = int(Bb * (N_LAYERS * per_layer_flops + 2 * D * EMBED_DIM))
    transcendentals = int(Bb * N_LAYERS * (N_HEADS * T * T + T * D_MLP))
    bytes_accessed = int(sum(int(a.size) * a.dtype.itemsize for a in args)
                         + Bb * EMBED_DIM * 4 + Bb * 4)
    ce = pl.CostEstimate(flops=flops, transcendentals=transcendentals,
                         bytes_accessed=bytes_accessed)

    grid_spec = pltpu.PrefetchScalarGridSpec(
        num_scalar_prefetch=1,
        grid=(Bb, N_LAYERS),
        in_specs=in_specs,
        out_specs=pl.BlockSpec((1, 1, EMBED_DIM), lambda b, l, eot: (b, 0, 0)),
        scratch_shapes=[pltpu.VMEM((T, D), jnp.float32)],
    )

    out = pl.pallas_call(
        functools.partial(encoder_kernel, n_heads=N_HEADS),
        grid_spec=grid_spec,
        out_shape=jax.ShapeDtypeStruct((Bb, 1, EMBED_DIM), jnp.float32),
        compiler_params=pltpu.CompilerParams(
            dimension_semantics=("parallel", "arbitrary")),
        cost_estimate=ce,
    )(eot, *args)
    return out[:, 0, :]                                        # (B, EMBED_DIM)


# ------------------------ pure-JAX reference ---------------------------------
def encode_text_ref(tokens, params):
    x = params['tok_emb'][tokens] + params['pos_emb'][None]
    x = x.astype(jnp.float32)
    causal = (jnp.arange(T)[None, :] <= jnp.arange(T)[:, None])[None]
    Dh = D // N_HEADS
    for lp in params['layers']:
        h = _layernorm(x, lp['ln1_g'], lp['ln1_b'])
        qkv = jnp.einsum('btd,de->bte', h, lp['wqkv']) + lp['bqkv']
        q, k, v = jnp.split(qkv, 3, axis=-1)
        outs = []
        for hh in range(N_HEADS):
            sl = slice(hh * Dh, (hh + 1) * Dh)
            s = jnp.einsum('bqd,bkd->bqk', q[..., sl], k[..., sl]) / jnp.sqrt(
                jnp.float32(Dh))
            s = jnp.where(causal, s, -1e30)
            p = jax.nn.softmax(s, axis=-1)
            outs.append(jnp.einsum('bqk,bkd->bqd', p, v[..., sl]))
        attn = jnp.concatenate(outs, axis=-1)
        x = x + jnp.einsum('btd,de->bte', attn, lp['wo']) + lp['bo']
        h2 = _layernorm(x, lp['ln2_g'], lp['ln2_b'])
        h2 = jnp.einsum('btd,de->bte', h2, lp['w1']) + lp['b1']
        h2 = h2 * jax.nn.sigmoid(1.702 * h2)
        x = x + jnp.einsum('bte,ed->btd', h2, lp['w2']) + lp['b2']
    x = _layernorm(x, params['lnf_g'], params['lnf_b'])
    eot = jnp.argmax(tokens, axis=-1)
    feat = x[jnp.arange(tokens.shape[0]), eot]
    return feat @ params['text_proj']


# --------------------------- param init --------------------------------------
def init_params(key):
    keys = iter(jax.random.split(key, 64))
    nxt = lambda: next(keys)

    def dense(shape, scale=0.02):
        return (scale * jax.random.normal(nxt(), shape)).astype(jnp.float32)

    layers = []
    for _ in range(N_LAYERS):
        layers.append(dict(
            ln1_g=jnp.ones((1, D), jnp.float32),
            ln1_b=jnp.zeros((1, D), jnp.float32),
            wqkv=dense((D, 3 * D)),
            bqkv=jnp.zeros((1, 3 * D), jnp.float32),
            wo=dense((D, D)),
            bo=jnp.zeros((1, D), jnp.float32),
            ln2_g=jnp.ones((1, D), jnp.float32),
            ln2_b=jnp.zeros((1, D), jnp.float32),
            w1=dense((D, D_MLP)),
            b1=jnp.zeros((1, D_MLP), jnp.float32),
            w2=dense((D_MLP, D)),
            b2=jnp.zeros((1, D), jnp.float32),
        ))
    return dict(
        tok_emb=dense((VOCAB, D)),
        pos_emb=dense((T, D), scale=0.01),
        layers=layers,
        lnf_g=jnp.ones((1, D), jnp.float32),
        lnf_b=jnp.zeros((1, D), jnp.float32),
        text_proj=dense((D, EMBED_DIM)),
    )


if __name__ == "__main__":
    key = jax.random.PRNGKey(0)
    pkey, tkey = jax.random.split(key)
    params = init_params(pkey)

    # Synthetic tokens; force the last position to hold the largest id so that
    # argmax(-1) (CLIP's EOT convention) lands on position T-1.
    tokens = jax.random.randint(tkey, (B, T), 1, VOCAB - 1, dtype=jnp.int32)
    tokens = tokens.at[:, -1].set(VOCAB - 1)

    out = encode_text(tokens, params)
    out = jax.block_until_ready(out)

    ref = encode_text_ref(tokens, params)
    assert out.shape == (B, EMBED_DIM)
    assert jnp.allclose(out, ref, rtol=1e-3, atol=1e-3), "mismatch vs reference"

    print("KERNEL_OK")
</pallas_src>

<mosaic_0001>
module attributes {stable_mosaic.version = 11 : i64} {
  func.func @encoder_kernel(%arg0: i32, %arg1: i32, %arg2: memref<2xi32, #tpu.memory_space<smem>>, %arg3: memref<1x8x32xf32, #tpu.memory_space<vmem>>, %arg4: memref<1x1x32xf32, #tpu.memory_space<vmem>>, %arg5: memref<1x1x32xf32, #tpu.memory_space<vmem>>, %arg6: memref<1x32x96xf32, #tpu.memory_space<vmem>>, %arg7: memref<1x1x96xf32, #tpu.memory_space<vmem>>, %arg8: memref<1x32x32xf32, #tpu.memory_space<vmem>>, %arg9: memref<1x1x32xf32, #tpu.memory_space<vmem>>, %arg10: memref<1x1x32xf32, #tpu.memory_space<vmem>>, %arg11: memref<1x1x32xf32, #tpu.memory_space<vmem>>, %arg12: memref<1x32x128xf32, #tpu.memory_space<vmem>>, %arg13: memref<1x1x128xf32, #tpu.memory_space<vmem>>, %arg14: memref<1x128x32xf32, #tpu.memory_space<vmem>>, %arg15: memref<1x1x32xf32, #tpu.memory_space<vmem>>, %arg16: memref<1x32xf32, #tpu.memory_space<vmem>>, %arg17: memref<1x32xf32, #tpu.memory_space<vmem>>, %arg18: memref<32x32xf32, #tpu.memory_space<vmem>>, %arg19: memref<1x1x32xf32, #tpu.memory_space<vmem>>, %arg20: memref<8x32xf32, #tpu.memory_space<vmem>>) attributes {dimension_semantics = [#tpu.dimension_semantics<parallel>, #tpu.dimension_semantics<arbitrary>], iteration_bounds = array<i64: 2, 2>, scalar_prefetch = 1 : i64, scratch_operands = 1 : i64, tpu.core_type = #tpu.core_type<tc>, window_params = [{transform_indices = @transform_0, window_bounds = array<i64: 1, 8, 32>}, {transform_indices = @transform_1, window_bounds = array<i64: 1, 1, 32>}, {transform_indices = @transform_2, window_bounds = array<i64: 1, 1, 32>}, {transform_indices = @transform_3, window_bounds = array<i64: 1, 32, 96>}, {transform_indices = @transform_4, window_bounds = array<i64: 1, 1, 96>}, {transform_indices = @transform_5, window_bounds = array<i64: 1, 32, 32>}, {transform_indices = @transform_6, window_bounds = array<i64: 1, 1, 32>}, {transform_indices = @transform_7, window_bounds = array<i64: 1, 1, 32>}, {transform_indices = @transform_8, window_bounds = array<i64: 1, 1, 32>}, {transform_indices = @transform_9, window_bounds = array<i64: 1, 32, 128>}, {transform_indices = @transform_10, window_bounds = array<i64: 1, 1, 128>}, {transform_indices = @transform_11, window_bounds = array<i64: 1, 128, 32>}, {transform_indices = @transform_12, window_bounds = array<i64: 1, 1, 32>}, {pipeline_mode = #tpu.pipeline_mode<synchronous>, transform_indices = @transform_13, window_bounds = array<i64: 1, 32>}, {pipeline_mode = #tpu.pipeline_mode<synchronous>, transform_indices = @transform_14, window_bounds = array<i64: 1, 32>}, {pipeline_mode = #tpu.pipeline_mode<synchronous>, transform_indices = @transform_15, window_bounds = array<i64: 32, 32>}, {transform_indices = @transform_16, window_bounds = array<i64: 1, 1, 32>}]} {
    %0 = arith.index_cast %arg0 : i32 to index
    %1 = memref.load %arg2[%0] : memref<2xi32, #tpu.memory_space<smem>>
    %c0_i32 = arith.constant 0 : i32
    %2 = arith.cmpi eq, %arg1, %c0_i32 : i32
    %3 = arith.extui %2 : i1 to i32
    %c0_i32_0 = arith.constant 0 : i32
    %4 = arith.cmpi ne, %3, %c0_i32_0 : i32
    scf.if %4 {
      %c0_61 = arith.constant 0 : index
      %c0_62 = arith.constant 0 : index
      %c0_63 = arith.constant 0 : index
      %131 = vector.load %arg3[%c0_61, %c0_62, %c0_63] : memref<1x8x32xf32, #tpu.memory_space<vmem>>, vector<1x8x32xf32>
      %132 = vector.shape_cast %131 : vector<1x8x32xf32> to vector<8x32xf32>
      %c0_64 = arith.constant 0 : index
      %c0_65 = arith.constant 0 : index
      %133 = vector.load %arg20[%c0_64, %c0_65] : memref<8x32xf32, #tpu.memory_space<vmem>>, vector<8x32xf32>
      tpu.vector_store %arg20[%c0_64, %c0_65], %132 {strides = array<i32>} : memref<8x32xf32, #tpu.memory_space<vmem>>, vector<8x32xf32>,
    } else {
    }
    %c0 = arith.constant 0 : index
    %c0_1 = arith.constant 0 : index
    %5 = vector.load %arg20[%c0, %c0_1] : memref<8x32xf32, #tpu.memory_space<vmem>>, vector<8x32xf32>
    %c0_2 = arith.constant 0 : index
    %c0_3 = arith.constant 0 : index
    %c0_4 = arith.constant 0 : index
    %6 = vector.load %arg4[%c0_2, %c0_3, %c0_4] : memref<1x1x32xf32, #tpu.memory_space<vmem>>, vector<1x1x32xf32>
    %7 = vector.shape_cast %6 : vector<1x1x32xf32> to vector<1x32xf32>
    %c0_5 = arith.constant 0 : index
    %c0_6 = arith.constant 0 : index
    %c0_7 = arith.constant 0 : index
    %8 = vector.load %arg5[%c0_5, %c0_6, %c0_7] : memref<1x1x32xf32, #tpu.memory_space<vmem>>, vector<1x1x32xf32>
    %9 = vector.shape_cast %8 : vector<1x1x32xf32> to vector<1x32xf32>
    %cst = arith.constant dense<0.000000e+00> : vector<8xf32>
    %10 = vector.multi_reduction <add>, %5, %cst [1] : vector<8x32xf32> to vector<8xf32>
    %11 = vector.shape_cast %10 : vector<8xf32> to vector<8x1xf32>
    %cst_8 = arith.constant 3.200000e+01 : f32
    %12 = vector.broadcast %cst_8 : f32 to vector<8x1xf32>
    %13 = arith.divf %11, %12 : vector<8x1xf32>
    %14 = vector.broadcast %13 : vector<8x1xf32> to vector<8x32xf32>
    %15 = arith.subf %5, %14 : vector<8x32xf32>
    %16 = vector.broadcast %13 : vector<8x1xf32> to vector<8x32xf32>
    %17 = arith.subf %5, %16 : vector<8x32xf32>
    %18 = arith.mulf %15, %17 : vector<8x32xf32>
    %cst_9 = arith.constant dense<0.000000e+00> : vector<8xf32>
    %19 = vector.multi_reduction <add>, %18, %cst_9 [1] : vector<8x32xf32> to vector<8xf32>
    %20 = vector.shape_cast %19 : vector<8xf32> to vector<8x1xf32>
    %cst_10 = arith.constant 3.200000e+01 : f32
    %21 = vector.broadcast %cst_10 : f32 to vector<8x1xf32>
    %22 = arith.divf %20, %21 : vector<8x1xf32>
    %23 = vector.broadcast %13 : vector<8x1xf32> to vector<8x32xf32>
    %24 = arith.subf %5, %23 : vector<8x32xf32>
    %cst_11 = arith.constant 9.99999974E-6 : f32
    %25 = vector.broadcast %cst_11 : f32 to vector<8x1xf32>
    %26 = arith.addf %22, %25 : vector<8x1xf32>
    %27 = math.rsqrt %26 : vector<8x1xf32>
    %28 = vector.broadcast %27 : vector<8x1xf32> to vector<8x32xf32>
    %29 = arith.mulf %24, %28 : vector<8x32xf32>
    %30 = vector.broadcast %7 : vector<1x32xf32> to vector<8x32xf32>
    %31 = arith.mulf %29, %30 : vector<8x32xf32>
    %32 = vector.broadcast %9 : vector<1x32xf32> to vector<8x32xf32>
    %33 = arith.addf %31, %32 : vector<8x32xf32>
    %c0_12 = arith.constant 0 : index
    %c0_13 = arith.constant 0 : index
    %c0_14 = arith.constant 0 : index
    %34 = vector.load %arg6[%c0_12, %c0_13, %c0_14] : memref<1x32x96xf32, #tpu.memory_space<vmem>>, vector<1x32x96xf32>
    %35 = vector.shape_cast %34 : vector<1x32x96xf32> to vector<32x96xf32>
    %cst_15 = arith.constant dense<0.000000e+00> : vector<8x96xf32>
    %36 = tpu.matmul %33, %35, %cst_15 {dimension_numbers = #tpu.dot_dimension_numbers<[1], [0], [0], [1], [0, 0, 1, 1], [], []>} : vector<8x32xf32>, vector<32x96xf32>, vector<8x96xf32> -> vector<8x96xf32>
    %c0_16 = arith.constant 0 : index
    %c0_17 = arith.constant 0 : index
    %c0_18 = arith.constant 0 : index
    %37 = vector.load %arg7[%c0_16, %c0_17, %c0_18] : memref<1x1x96xf32, #tpu.memory_space<vmem>>, vector<1x1x96xf32>
    %38 = vector.shape_cast %37 : vector<1x1x96xf32> to vector<1x96xf32>
    %39 = vector.broadcast %38 : vector<1x96xf32> to vector<8x96xf32>
    %40 = arith.addf %36, %39 : vector<8x96xf32>
    %41 = vector.extract_strided_slice %40 {offsets = [0, 0], sizes = [8, 32], strides = [1, 1]} : vector<8x96xf32> to vector<8x32xf32>
    %42 = vector.shape_cast %41 : vector<8x32xf32> to vector<8x2x16xf32>
    %43 = vector.extract_strided_slice %40 {offsets = [0, 32], sizes = [8, 32], strides = [1, 1]} : vector<8x96xf32> to vector<8x32xf32>
    %44 = vector.shape_cast %43 : vector<8x32xf32> to vector<8x2x16xf32>
    %45 = vector.extract_strided_slice %40 {offsets = [0, 64], sizes = [8, 32], strides = [1, 1]} : vector<8x96xf32> to vector<8x32xf32>
    %46 = vector.shape_cast %45 : vector<8x32xf32> to vector<8x2x16xf32>
    "tpu.trace_start"() <{level = 10 : i32, message = "qhd,khd->hqk"}> : () -> ()
    %cst_19 = arith.constant dense<0.000000e+00> : vector<2x8x8xf32>
    %47 = tpu.matmul %42, %44, %cst_19 {dimension_numbers = #tpu.dot_dimension_numbers<[2], [2], [0], [0], [0, 1, 0, 0, 1, 0], [1], [1]>} : vector<8x2x16xf32>, vector<8x2x16xf32>, vector<2x8x8xf32> -> vector<2x8x8xf32>
    "tpu.trace_stop"() : () -> ()
    %48 = tpu.iota {dimensions = array<i32: 0>} : vector<8x8xi32>
    %49 = tpu.iota {dimensions = array<i32: 1>} : vector<8x8xi32>
    %50 = arith.cmpi sle, %49, %48 : vector<8x8xi32>
    %51 = vector.shape_cast %50 : vector<8x8xi1> to vector<1x8x8xi1>
    %cst_20 = arith.constant -1.000000e+30 : f32
    %52 = vector.shape_cast %51 : vector<1x8x8xi1> to vector<1x8x8xi1>
    %53 = vector.broadcast %52 : vector<1x8x8xi1> to vector<2x8x8xi1>
    %54 = vector.broadcast %cst_20 : f32 to vector<2x8x8xf32>
    %55 = arith.select %53, %47, %54 : vector<2x8x8xi1>, vector<2x8x8xf32>
    %cst_21 = arith.constant dense<0xFF800000> : vector<2x8xf32>
    %56 = vector.multi_reduction <maximumf>, %55, %cst_21 [2] : vector<2x8x8xf32> to vector<2x8xf32>
    %57 = vector.shape_cast %56 : vector<2x8xf32> to vector<2x8x1xf32>
    %58 = vector.broadcast %57 : vector<2x8x1xf32> to vector<2x8x8xf32>
    %59 = arith.subf %55, %58 : vector<2x8x8xf32>
    %60 = math.exp %59 : vector<2x8x8xf32>
    %cst_22 = arith.constant dense<0.000000e+00> : vector<2x8xf32>
    %61 = vector.multi_reduction <add>, %60, %cst_22 [2] : vector<2x8x8xf32> to vector<2x8xf32>
    %62 = vector.shape_cast %61 : vector<2x8xf32> to vector<2x8x1xf32>
    %63 = vector.broadcast %62 : vector<2x8x1xf32> to vector<2x8x8xf32>
    %64 = arith.divf %60, %63 : vector<2x8x8xf32>
    "tpu.trace_start"() <{level = 10 : i32, message = "hqk,khd->qhd"}> : () -> ()
    %cst_23 = arith.constant dense<0.000000e+00> : vector<2x16x8xf32>
    %65 = tpu.matmul %46, %64, %cst_23 {dimension_numbers = #tpu.dot_dimension_numbers<[0], [2], [2], [1], [0, 1, 0, 2, 1, 1], [1], [0]>} : vector<8x2x16xf32>, vector<2x8x8xf32>, vector<2x16x8xf32> -> vector<2x16x8xf32>
    %66 = tpu.transpose %65, [2, 0, 1] : vector<2x16x8xf32> -> vector<8x2x16xf32>
    "tpu.trace_stop"() : () -> ()
    %67 = vector.shape_cast %66 : vector<8x2x16xf32> to vector<8x32xf32>
    %c0_24 = arith.constant 0 : index
    %c0_25 = arith.constant 0 : index
    %c0_26 = arith.constant 0 : index
    %68 = vector.load %arg8[%c0_24, %c0_25, %c0_26] : memref<1x32x32xf32, #tpu.memory_space<vmem>>, vector<1x32x32xf32>
    %69 = vector.shape_cast %68 : vector<1x32x32xf32> to vector<32x32xf32>
    %cst_27 = arith.constant dense<0.000000e+00> : vector<8x32xf32>
    %70 = tpu.matmul %67, %69, %cst_27 {dimension_numbers = #tpu.dot_dimension_numbers<[1], [0], [0], [1], [0, 0, 1, 1], [], []>} : vector<8x32xf32>, vector<32x32xf32>, vector<8x32xf32> -> vector<8x32xf32>
    %71 = arith.addf %5, %70 : vector<8x32xf32>
    %c0_28 = arith.constant 0 : index
    %c0_29 = arith.constant 0 : index
    %c0_30 = arith.constant 0 : index
    %72 = vector.load %arg9[%c0_28, %c0_29, %c0_30] : memref<1x1x32xf32, #tpu.memory_space<vmem>>, vector<1x1x32xf32>
    %73 = vector.shape_cast %72 : vector<1x1x32xf32> to vector<1x32xf32>
    %74 = vector.broadcast %73 : vector<1x32xf32> to vector<8x32xf32>
    %75 = arith.addf %71, %74 : vector<8x32xf32>
    %c0_31 = arith.constant 0 : index
    %c0_32 = arith.constant 0 : index
    %c0_33 = arith.constant 0 : index
    %76 = vector.load %arg10[%c0_31, %c0_32, %c0_33] : memref<1x1x32xf32, #tpu.memory_space<vmem>>, vector<1x1x32xf32>
    %77 = vector.shape_cast %76 : vector<1x1x32xf32> to vector<1x32xf32>
    %c0_34 = arith.constant 0 : index
    %c0_35 = arith.constant 0 : index
    %c0_36 = arith.constant 0 : index
    %78 = vector.load %arg11[%c0_34, %c0_35, %c0_36] : memref<1x1x32xf32, #tpu.memory_space<vmem>>, vector<1x1x32xf32>
    %79 = vector.shape_cast %78 : vector<1x1x32xf32> to vector<1x32xf32>
    %cst_37 = arith.constant dense<0.000000e+00> : vector<8xf32>
    %80 = vector.multi_reduction <add>, %75, %cst_37 [1] : vector<8x32xf32> to vector<8xf32>
    %81 = vector.shape_cast %80 : vector<8xf32> to vector<8x1xf32>
    %cst_38 = arith.constant 3.200000e+01 : f32
    %82 = vector.broadcast %cst_38 : f32 to vector<8x1xf32>
    %83 = arith.divf %81, %82 : vector<8x1xf32>
    %84 = vector.broadcast %83 : vector<8x1xf32> to vector<8x32xf32>
    %85 = arith.subf %75, %84 : vector<8x32xf32>
    %86 = vector.broadcast %83 : vector<8x1xf32> to vector<8x32xf32>
    %87 = arith.subf %75, %86 : vector<8x32xf32>
    %88 = arith.mulf %85, %87 : vector<8x32xf32>
    %cst_39 = arith.constant dense<0.000000e+00> : vector<8xf32>
    %89 = vector.multi_reduction <add>, %88, %cst_39 [1] : vector<8x32xf32> to vector<8xf32>
    %90 = vector.shape_cast %89 : vector<8xf32> to vector<8x1xf32>
    %cst_40 = arith.constant 3.200000e+01 : f32
    %91 = vector.broadcast %cst_40 : f32 to vector<8x1xf32>
    %92 = arith.divf %90, %91 : vector<8x1xf32>
    %93 = vector.broadcast %83 : vector<8x1xf32> to vector<8x32xf32>
    %94 = arith.subf %75, %93 : vector<8x32xf32>
    %cst_41 = arith.constant 9.99999974E-6 : f32
    %95 = vector.broadcast %cst_41 : f32 to vector<8x1xf32>
    %96 = arith.addf %92, %95 : vector<8x1xf32>
    %97 = math.rsqrt %96 : vector<8x1xf32>
    %98 = vector.broadcast %97 : vector<8x1xf32> to vector<8x32xf32>
    %99 = arith.mulf %94, %98 : vector<8x32xf32>
    %100 = vector.broadcast %77 : vector<1x32xf32> to vector<8x32xf32>
    %101 = arith.mulf %99, %100 : vector<8x32xf32>
    %102 = vector.broadcast %79 : vector<1x32xf32> to vector<8x32xf32>
    %103 = arith.addf %101, %102 : vector<8x32xf32>
    %c0_42 = arith.constant 0 : index
    %c0_43 = arith.constant 0 : index
    %c0_44 = arith.constant 0 : index
    %104 = vector.load %arg12[%c0_42, %c0_43, %c0_44] : memref<1x32x128xf32, #tpu.memory_space<vmem>>, vector<1x32x128xf32>
    %105 = vector.shape_cast %104 : vector<1x32x128xf32> to vector<32x128xf32>
    %cst_45 = arith.constant dense<0.000000e+00> : vector<8x128xf32>
    %106 = tpu.matmul %103, %105, %cst_45 {dimension_numbers = #tpu.dot_dimension_numbers<[1], [0], [0], [1], [0, 0, 1, 1], [], []>} : vector<8x32xf32>, vector<32x128xf32>, vector<8x128xf32> -> vector<8x128xf32>
    %c0_46 = arith.constant 0 : index
    %c0_47 = arith.constant 0 : index
    %c0_48 = arith.constant 0 : index
    %107 = vector.load %arg13[%c0_46, %c0_47, %c0_48] : memref<1x1x128xf32, #tpu.memory_space<vmem>>, vector<1x1x128xf32>
    %108 = vector.shape_cast %107 : vector<1x1x128xf32> to vector<1x128xf32>
    %109 = vector.broadcast %108 : vector<1x128xf32> to vector<8x128xf32>
    %110 = arith.addf %106, %109 : vector<8x128xf32>
    %cst_49 = arith.constant 1.702000e+00 : f32
    %111 = vector.broadcast %cst_49 : f32 to vector<8x128xf32>
    %112 = arith.mulf %111, %110 : vector<8x128xf32>
    %113 = arith.negf %112 : vector<8x128xf32>
    %114 = math.exp %113 : vector<8x128xf32>
    %cst_50 = arith.constant 1.000000e+00 : f32
    %115 = vector.broadcast %cst_50 : f32 to vector<8x128xf32>
    %116 = arith.addf %115, %114 : vector<8x128xf32>
    %117 = arith.divf %115, %116 : vector<8x128xf32>
    %118 = arith.mulf %110, %117 : vector<8x128xf32>
    %c0_51 = arith.constant 0 : index
    %c0_52 = arith.constant 0 : index
    %c0_53 = arith.constant 0 : index
    %119 = vector.load %arg14[%c0_51, %c0_52, %c0_53] : memref<1x128x32xf32, #tpu.memory_space<vmem>>, vector<1x128x32xf32>
    %120 = vector.shape_cast %119 : vector<1x128x32xf32> to vector<128x32xf32>
    %cst_54 = arith.constant dense<0.000000e+00> : vector<8x32xf32>
    %121 = tpu.matmul %118, %120, %cst_54 {dimension_numbers = #tpu.dot_dimension_numbers<[1], [0], [0], [1], [0, 0, 1, 1], [], []>} : vector<8x128xf32>, vector<128x32xf32>, vector<8x32xf32> -> vector<8x32xf32>
    %122 = arith.addf %75, %121 : vector<8x32xf32>
    %c0_55 = arith.constant 0 : index
    %c0_56 = arith.constant 0 : index
    %c0_57 = arith.constant 0 : index
    %123 = vector.load %arg15[%c0_55, %c0_56, %c0_57] : memref<1x1x32xf32, #tpu.memory_space<vmem>>, vector<1x1x32xf32>
    %124 = vector.shape_cast %123 : vector<1x1x32xf32> to vector<1x32xf32>
    %125 = vector.broadcast %124 : vector<1x32xf32> to vector<8x32xf32>
    %126 = arith.addf %122, %125 : vector<8x32xf32>
    %c0_58 = arith.constant 0 : index
    %c0_59 = arith.constant 0 : index
    %127 = vector.load %arg20[%c0_58, %c0_59] : memref<8x32xf32, #tpu.memory_space<vmem>>, vector<8x32xf32>
    tpu.vector_store %arg20[%c0_58, %c0_59], %126 {strides = array<i32>} : memref<8x32xf32, #tpu.memory_space<vmem>>, vector<8x32xf32>,
    %c1_i32 = arith.constant 1 : i32
    %128 = arith.cmpi eq, %arg1, %c1_i32 : i32
    %129 = arith.extui %128 : i1 to i32
    %c0_i32_60 = arith.constant 0 : i32
    %130 = arith.cmpi ne, %129, %c0_i32_60 : i32
    scf.if %130 {
      %131 = arith.index_cast %1 : i32 to index
      %c0_61 = arith.constant 0 : index
      %132 = vector.load %arg20[%131, %c0_61] : memref<8x32xf32, #tpu.memory_space<vmem>>, vector<1x32xf32>
      %c0_62 = arith.constant 0 : index
      %c0_63 = arith.constant 0 : index
      %133 = vector.load %arg16[%c0_62, %c0_63] : memref<1x32xf32, #tpu.memory_space<vmem>>, vector<1x32xf32>
      %c0_64 = arith.constant 0 : index
      %c0_65 = arith.constant 0 : index
      %134 = vector.load %arg17[%c0_64, %c0_65] : memref<1x32xf32, #tpu.memory_space<vmem>>, vector<1x32xf32>
      %cst_66 = arith.constant dense<0.000000e+00> : vector<1xf32>
      %135 = vector.multi_reduction <add>, %132, %cst_66 [1] : vector<1x32xf32> to vector<1xf32>
      %136 = vector.shape_cast %135 : vector<1xf32> to vector<1x1xf32>
      %cst_67 = arith.constant 3.200000e+01 : f32
      %137 = vector.broadcast %cst_67 : f32 to vector<1x1xf32>
      %138 = arith.divf %136, %137 : vector<1x1xf32>
      %139 = vector.broadcast %138 : vector<1x1xf32> to vector<1x32xf32>
      %140 = arith.subf %132, %139 : vector<1x32xf32>
      %141 = vector.broadcast %138 : vector<1x1xf32> to vector<1x32xf32>
      %142 = arith.subf %132, %141 : vector<1x32xf32>
      %143 = arith.mulf %140, %142 : vector<1x32xf32>
      %cst_68 = arith.constant dense<0.000000e+00> : vector<1xf32>
      %144 = vector.multi_reduction <add>, %143, %cst_68 [1] : vector<1x32xf32> to vector<1xf32>
      %145 = vector.shape_cast %144 : vector<1xf32> to vector<1x1xf32>
      %cst_69 = arith.constant 3.200000e+01 : f32
      %146 = vector.broadcast %cst_69 : f32 to vector<1x1xf32>
      %147 = arith.divf %145, %146 : vector<1x1xf32>
      %148 = vector.broadcast %138 : vector<1x1xf32> to vector<1x32xf32>
      %149 = arith.subf %132, %148 : vector<1x32xf32>
      %cst_70 = arith.constant 9.99999974E-6 : f32
      %150 = vector.broadcast %cst_70 : f32 to vector<1x1xf32>
      %151 = arith.addf %147, %150 : vector<1x1xf32>
      %152 = math.rsqrt %151 : vector<1x1xf32>
      %153 = vector.broadcast %152 : vector<1x1xf32> to vector<1x32xf32>
      %154 = arith.mulf %149, %153 : vector<1x32xf32>
      %155 = arith.mulf %154, %133 : vector<1x32xf32>
      %156 = arith.addf %155, %134 : vector<1x32xf32>
      %c0_71 = arith.constant 0 : index
      %c0_72 = arith.constant 0 : index
      %157 = vector.load %arg18[%c0_71, %c0_72] : memref<32x32xf32, #tpu.memory_space<vmem>>, vector<32x32xf32>
      %cst_73 = arith.constant dense<0.000000e+00> : vector<1x32xf32>
      %158 = tpu.matmul %156, %157, %cst_73 {dimension_numbers = #tpu.dot_dimension_numbers<[1], [0], [0], [1], [0, 0, 1, 1], [], []>} : vector<1x32xf32>, vector<32x32xf32>, vector<1x32xf32> -> vector<1x32xf32>
      %c0_74 = arith.constant 0 : index
      %c0_75 = arith.constant 0 : index
      %c0_76 = arith.constant 0 : index
      %159 = vector.load %arg19[%c0_74, %c0_75, %c0_76] : memref<1x1x32xf32, #tpu.memory_space<vmem>>, vector<1x1x32xf32>
      %160 = vector.shape_cast %159 : vector<1x1x32xf32> to vector<1x32xf32>
      %161 = vector.shape_cast %158 : vector<1x32xf32> to vector<1x1x32xf32>
      tpu.vector_store %arg19[%c0_74, %c0_75, %c0_76], %161 {strides = array<i32>} : memref<1x1x32xf32, #tpu.memory_space<vmem>>, vector<1x1x32xf32>,
    } else {
    }
    return
  }
  func.func @transform_0(%arg0: i32, %arg1: i32, %arg2: memref<2xi32, #tpu.memory_space<smem>>) -> (i32, i32, i32) {
    %c0_i32 = arith.constant 0 : i32
    %c0_i32_0 = arith.constant 0 : i32
    %c0_i32_1 = arith.constant 0 : i32
    return %arg0, %c0_i32, %c0_i32_0 : i32, i32, i32
  }
  func.func @transform_1(%arg0: i32, %arg1: i32, %arg2: memref<2xi32, #tpu.memory_space<smem>>) -> (i32, i32, i32) {
    %c0_i32 = arith.constant 0 : i32
    %c0_i32_0 = arith.constant 0 : i32
    %c0_i32_1 = arith.constant 0 : i32
    return %arg1, %c0_i32, %c0_i32_0 : i32, i32, i32
  }
  func.func @transform_2(%arg0: i32, %arg1: i32, %arg2: memref<2xi32, #tpu.memory_space<smem>>) -> (i32, i32, i32) {
    %c0_i32 = arith.constant 0 : i32
    %c0_i32_0 = arith.constant 0 : i32
    %c0_i32_1 = arith.constant 0 : i32
    return %arg1, %c0_i32, %c0_i32_0 : i32, i32, i32
  }
  func.func @transform_3(%arg0: i32, %arg1: i32, %arg2: memref<2xi32, #tpu.memory_space<smem>>) -> (i32, i32, i32) {
    %c0_i32 = arith.constant 0 : i32
    %c0_i32_0 = arith.constant 0 : i32
    %c0_i32_1 = arith.constant 0 : i32
    return %arg1, %c0_i32, %c0_i32_0 : i32, i32, i32
  }
  func.func @transform_4(%arg0: i32, %arg1: i32, %arg2: memref<2xi32, #tpu.memory_space<smem>>) -> (i32, i32, i32) {
    %c0_i32 = arith.constant 0 : i32
    %c0_i32_0 = arith.constant 0 : i32
    %c0_i32_1 = arith.constant 0 : i32
    return %arg1, %c0_i32, %c0_i32_0 : i32, i32, i32
  }
  func.func @transform_5(%arg0: i32, %arg1: i32, %arg2: memref<2xi32, #tpu.memory_space<smem>>) -> (i32, i32, i32) {
    %c0_i32 = arith.constant 0 : i32
    %c0_i32_0 = arith.constant 0 : i32
    %c0_i32_1 = arith.constant 0 : i32
    return %arg1, %c0_i32, %c0_i32_0 : i32, i32, i32
  }
  func.func @transform_6(%arg0: i32, %arg1: i32, %arg2: memref<2xi32, #tpu.memory_space<smem>>) -> (i32, i32, i32) {
    %c0_i32 = arith.constant 0 : i32
    %c0_i32_0 = arith.constant 0 : i32
    %c0_i32_1 = arith.constant 0 : i32
    return %arg1, %c0_i32, %c0_i32_0 : i32, i32, i32
  }
  func.func @transform_7(%arg0: i32, %arg1: i32, %arg2: memref<2xi32, #tpu.memory_space<smem>>) -> (i32, i32, i32) {
    %c0_i32 = arith.constant 0 : i32
    %c0_i32_0 = arith.constant 0 : i32
    %c0_i32_1 = arith.constant 0 : i32
    return %arg1, %c0_i32, %c0_i32_0 : i32, i32, i32
  }
  func.func @transform_8(%arg0: i32, %arg1: i32, %arg2: memref<2xi32, #tpu.memory_space<smem>>) -> (i32, i32, i32) {
    %c0_i32 = arith.constant 0 : i32
    %c0_i32_0 = arith.constant 0 : i32
    %c0_i32_1 = arith.constant 0 : i32
    return %arg1, %c0_i32, %c0_i32_0 : i32, i32, i32
  }
  func.func @transform_9(%arg0: i32, %arg1: i32, %arg2: memref<2xi32, #tpu.memory_space<smem>>) -> (i32, i32, i32) {
    %c0_i32 = arith.constant 0 : i32
    %c0_i32_0 = arith.constant 0 : i32
    %c0_i32_1 = arith.constant 0 : i32
    return %arg1, %c0_i32, %c0_i32_0 : i32, i32, i32
  }
  func.func @transform_10(%arg0: i32, %arg1: i32, %arg2: memref<2xi32, #tpu.memory_space<smem>>) -> (i32, i32, i32) {
    %c0_i32 = arith.constant 0 : i32
    %c0_i32_0 = arith.constant 0 : i32
    %c0_i32_1 = arith.constant 0 : i32
    return %arg1, %c0_i32, %c0_i32_0 : i32, i32, i32
  }
  func.func @transform_11(%arg0: i32, %arg1: i32, %arg2: memref<2xi32, #tpu.memory_space<smem>>) -> (i32, i32, i32) {
    %c0_i32 = arith.constant 0 : i32
    %c0_i32_0 = arith.constant 0 : i32
    %c0_i32_1 = arith.constant 0 : i32
    return %arg1, %c0_i32, %c0_i32_0 : i32, i32, i32
  }
  func.func @transform_12(%arg0: i32, %arg1: i32, %arg2: memref<2xi32, #tpu.memory_space<smem>>) -> (i32, i32, i32) {
    %c0_i32 = arith.constant 0 : i32
    %c0_i32_0 = arith.constant 0 : i32
    %c0_i32_1 = arith.constant 0 : i32
    return %arg1, %c0_i32, %c0_i32_0 : i32, i32, i32
  }
  func.func @transform_13(%arg0: i32, %arg1: i32, %arg2: memref<2xi32, #tpu.memory_space<smem>>) -> (i32, i32) {
    %c0_i32 = arith.constant 0 : i32
    %c0_i32_0 = arith.constant 0 : i32
    %c0_i32_1 = arith.constant 0 : i32
    return %c0_i32, %c0_i32_0 : i32, i32
  }
  func.func @transform_14(%arg0: i32, %arg1: i32, %arg2: memref<2xi32, #tpu.memory_space<smem>>) -> (i32, i32) {
    %c0_i32 = arith.constant 0 : i32
    %c0_i32_0 = arith.constant 0 : i32
    %c0_i32_1 = arith.constant 0 : i32
    return %c0_i32, %c0_i32_0 : i32, i32
  }
  func.func @transform_15(%arg0: i32, %arg1: i32, %arg2: memref<2xi32, #tpu.memory_space<smem>>) -> (i32, i32) {
    %c0_i32 = arith.constant 0 : i32
    %c0_i32_0 = arith.constant 0 : i32
    %c0_i32_1 = arith.constant 0 : i32
    return %c0_i32, %c0_i32_0 : i32, i32
  }
  func.func @transform_16(%arg0: i32, %arg1: i32, %arg2: memref<2xi32, #tpu.memory_space<smem>>) -> (i32, i32, i32) {
    %c0_i32 = arith.constant 0 : i32
    %c0_i32_0 = arith.constant 0 : i32
    %c0_i32_1 = arith.constant 0 : i32
    return %arg0, %c0_i32, %c0_i32_0 : i32, i32, i32
  }
}

</mosaic_0001>

<bundles_post_ra>
// kernel: tpu_custom_call.1
= control target key start
LH: loop header
LB: loop body
LE: loop exit
PB: predicated region body
PF: predicated region fallthrough
CT: control target
= control target key end

     0   :  { %s1970_s27 = smov [#allocation4]   ;;  %s2407_s0 = inlined_call_operand.vmem [shape: s32[2], index: 0, kind: input, shape index: {}]   ;;  %s2408_s1 = inlined_call_operand.vmem [shape: f32[2,8,32], index: 1, kind: input, shape index: {}]   ;;  %s2409_s2 = inlined_call_operand.vmem [shape: f32[2,1,32], index: 2, kind: input, shape index: {}]   ;;  %s2410_s3 = inlined_call_operand.vmem [shape: f32[2,1,32], index: 3, kind: input, shape index: {}]   ;;  %s2411_s4 = inlined_call_operand.vmem [shape: f32[2,32,96], index: 4, kind: input, shape index: {}]   ;;  %s2412_s5 = inlined_call_operand.vmem [shape: f32[2,1,96], index: 5, kind: input, shape index: {}]   ;;  %s2413_s6 = inlined_call_operand.vmem [shape: f32[2,32,32], index: 6, kind: input, shape index: {}]   ;;  %s2414_s7 = inlined_call_operand.vmem [shape: f32[2,1,32], index: 7, kind: input, shape index: {}]   ;;  %s2415_s8 = inlined_call_operand.vmem [shape: f32[2,1,32], index: 8, kind: input, shape index: {}]   ;;  %s2416_s9 = inlined_call_operand.vmem [shape: f32[2,1,32], index: 9, kind: input, shape index: {}]   ;;  %s2417_s10 = inlined_call_operand.vmem [shape: f32[2,32,128], index: 10, kind: input, shape index: {}]   ;;  %s2418_s11 = inlined_call_operand.vmem [shape: f32[2,1,128], index: 11, kind: input, shape index: {}]   ;;  %s2419_s12 = inlined_call_operand.vmem [shape: f32[2,128,32], index: 12, kind: input, shape index: {}]   ;;  %s2420_s13 = inlined_call_operand.vmem [shape: f32[2,1,32], index: 13, kind: input, shape index: {}]   ;;  %s2421_s14 = inlined_call_operand.vmem [shape: f32[1,32], index: 14, kind: input, shape index: {}]   ;;  %s2422_s15 = inlined_call_operand.vmem [shape: f32[1,32], index: 15, kind: input, shape index: {}]   ;;  %s2423_s16 = inlined_call_operand.vmem [shape: f32[32,32], index: 16, kind: input, shape index: {}]   ;;  %s2424_s17 = inlined_call_operand.hbm [shape: f32[2,1,32], index: 17, kind: output, shape index: {}]  }
   0x1   :  { %2439 = sst [smem:[#allocation22_spill]] %s2407_s0 }
   0x2   :  { %2440 = sst [smem:[#allocation23_spill]] %s2408_s1 }
   0x3   :  { %2441 = sst [smem:[#allocation24_spill]] %s2410_s3 }
   0x4   :  { %2442 = sst [smem:[#allocation25_spill]] %s2411_s4 }
   0x5   :  { %2443 = sst [smem:[#allocation26_spill]] %s2413_s6 }
   0x6   :  { %2444 = sst [smem:[#allocation27_spill]] %s2418_s11 }
   0x7   :  { %2445 = sst [smem:[#allocation28_spill]] %s2421_s14 }
   0x8   :  { %2446 = sst [smem:[#allocation29_spill]] %s2422_s15 }
   0x9   :  { %2447 = sst [smem:[#allocation30_spill]] %s2423_s16 }
   0xa   :  { %2448 = sst [smem:[#allocation31_spill]] %s2424_s17 }
   0xb   :  { %s2449_s26 = sld [smem:[#allocation22_spill]] }
  0x11   :  { %s23_s11 = sshll.u32 %s2449_s26, 4  ;;  %s24_s11 = int_to_ptr.vmem [resolvable:$true] %s23_s11 }
  0x12   :  { %26 = dma.vmem_to_smem %s24_s11, 16, %s1970_s27, [#allocation3] }
  0x13   :  { %1932 = dma.done.wait [#allocation3], 16 }
  0x14   :  { %1933 = vsyncadd [#allocation3], 4294967280 }
  0x15   :  { %29 = sfence }
  0x16   :  { %30 = vsyncpa [#allocation6], 0 }
  0x17   :  { %32 = vsyncpa [#allocation6 + $0x1], 0  ;;  %s2071_s28 = smov 0   ;;  %s2073_s29 = smov 0  }
  0x18   :  { %s2075_s0 = smov 0   ;;  %s2077_s30 = smov 0  }
  0x19   :  { %s2079_s18 = smov 0   ;;  %s2081_s19 = smov 0  }
  0x1a   :  { %s2083_s1 = smov 0   ;;  %s2085_s11 = smov 0  }
  0x1b LB: > { %2450 = sst [smem:[#allocation9_spill]] %s1940_s28  ;;  %s1700_s20 = sadd.s32 4294967295, %s1968_s11   ;;  %s1968_s11 = sphi %s2085_s11, %s38_s11   ;;  %s1964_s1 = sphi %s2083_s1, %s2496_s1   ;;  %s1960_s19 = sphi %s2081_s19, %s2495_s19   ;;  %s1956_s18 = sphi %s2079_s18, %s2494_s18   ;;  %s1952_s30 = sphi %s2077_s30, %s2493_s30   ;;  %s1948_s0 = sphi %s2075_s0, %s2492_s0   ;;  %s1944_s29 = sphi %s2073_s29, %s2498_s29   ;;  %s1940_s28 = sphi %s2071_s28, %s2497_s28  }
  0x1c   : > { %2451 = sst [smem:[#allocation10_spill]] %s1948_s0  ;;  %s1701_s21 = sadd.s32 4294967294, %s1968_s11  }
  0x1d   : > { %2452 = sst [smem:[#allocation11_spill]] %s1956_s18  ;;  %s47_s22 = sadd.s32 1, %s1960_s19 }
  0x1e   : > { %2453 = sst [smem:[#allocation12_spill]] %s1960_s19  ;;  %p48_p0 = scmp.ge.s32.totalorder %s47_s22, 2 }
  0x1f   : > { %2454 = sst [smem:[#allocation13_spill]] %s1964_s1  ;;  %s50_s23 = sadd.s32 1, %s1964_s1 }
  0x20   : > { %2455 = sst [smem:[#allocation14_spill]] %s1968_s11  ;;  %p468_p1 = scmp.ne.s32.totalorder %s1948_s0, %s1944_s29 }
  0x21   : > { %p469_p2 = scmp.eq.s32.totalorder %s1700_s20, 3  ;;  %s2500_s22 = smov (%p48_p0, %s47_s22), 0 }
  0x22   : > { %2456 = sst [smem:[#allocation15_spill]] %s2500_s22  ;;  %s2502_s23 = smov (!%p48_p0, %s50_s23), %s1964_s1 }
  0x23   : > { %p2120_p3 = por %p469_p2, %p468_p1  ;;  %p474_p4 = scmp.ne.s32.totalorder %s1944_s29, %s1940_s28 }
  0x24   : > { %p52_p5 = scmp.ge.s32.totalorder %s2502_s23, 2  ;;  %p475_p6 = scmp.eq.s32.totalorder %s1701_s21, 3 }
  0x25   : > { %s2457_s24 = scalar_select %p2120_p3, 1, 0 }
  0x26   : > { %p1704_p7 = scmp.ge.s32.totalorder %s1968_s11, 1  ;;  %p589_p8 = scmp.lt.s32.totalorder %s1968_s11, 5 }
  0x27   : > { %2458 = sst [smem:[#allocation16_spill]] %s2457_s24  ;;  %s2504_s23 = smov (%p52_p5, %s2502_s23), 0 }
  0x28   : > { %2459 = sst [smem:[#allocation17_spill]] %s2504_s23  ;;  %p2130_p9 = por %p475_p6, %p474_p4 }
  0x29   : > { %p590_p10 = pnand %p1704_p7, %p589_p8  ;;  %s455_s26 = ssub.s32 %s1964_s1, %s2504_s23 }
  0x2a   : > { %s2460_s25 = scalar_select %p2130_p9, 1, 0 }
  0x2b   : > { %s458_s27 = sadd.s32 1, %s1948_s0  ;;  %p456_p11 = scmp.eq.s32.totalorder %s455_s26, 0 }
  0x2c   : > { %2461 = sst [smem:[#allocation18_spill]] %s2460_s25  ;;  %593 = sbr.rel (%p590_p10) target bundleno = 2973 (0xb9d), region = 84 }
  0x2d   : > { %s2138_s20 = scalar_select %p456_p11, %s1948_s0, %s458_s27  }
  0x2f   : > { %2462 = sst [smem:[#allocation19_spill]] %s2138_s20 }
  0x31   : > { %p681_p12 = scmp.lt.s32.totalorder %s1956_s18, 1  ;;  %p685_p13 = scmp.lt.s32.totalorder %s1952_s30, 1 }
  0x32   : > { %s2148_s27 = sld [smem:[#allocation4 + %s1956_s18]]  ;;  %s2470_s14 = sand.u32 1, %s1944_s29  }
  0x33   : > { %s682_s22 = scalar_select %p681_p12, %s1956_s18, 1 }
  0x34   : > { %s2145_s19 = scalar_select %p685_p13, %s1952_s30, 1 }
  0x35   : > { %s1705_s26 = sshll.u32 %s682_s22, 3  ;;  %s2464_s1 = sld [smem:[#allocation23_spill]] }
  0x36   : > { %s1731_s15 = sshll.u32 %s2145_s19, 5  ;;  %s2466_s4 = sld [smem:[#allocation25_spill]] }
  0x37   : > { %s2467_s6 = sld [smem:[#allocation26_spill]]  ;;  %s728_s11 = scalar_lea.vmem %s2420_s13, %s2145_s19 }
  0x38   : > { %2463 = sst [smem:[#allocation20_spill]] %s2148_s27  ;;  %s2191_s27 = scalar_lea.vmem %s2417_s10, %s1731_s15 }
  0x39   : > { %s2469_s23 = sld [smem:[#allocation27_spill]]  ;;  %s2209_s16 = scalar_lea.vmem [#allocation5], %s2470_s14 }
  0x3a   : > { %p1714_p0 = scmp.ne.s32.totalorder %s1952_s30, 0 }
  0x3b   : > { %s684_s20 = scalar_lea.vmem %s2464_s1, %s1705_s26 }
  0x3c   : > { %s2165_s22 = scalar_lea.vmem %s2466_s4, %s1731_s15  ;;  %s712_s4 = scalar_lea.vmem %s2416_s9, %s2145_s19 }
  0x3d   : > { %s2174_s26 = scalar_lea.vmem %s2467_s6, %s1731_s15  ;;  %733 = sbr.rel (%p1714_p0) target bundleno = 68 (0x44), region = 88 }
  0x3e   : > { %2468 = sst [smem:[#allocation21_spill]] %s2174_s26  ;;  %s1734_s26 = sshll.u32 %s2145_s19, 7 }
  0x3f   : > { %s720_s6 = scalar_lea.vmem %s2469_s23, %s2145_s19  ;;  %s2205_s28 = scalar_lea.vmem %s2419_s12, %s1734_s26 }
  0x42   : > { %v734_v0 = vld [vmem:[%s684_s20] sm:$0xff]  ;;  %vm735_vm0 = vcmask 261120  }
  0x43   : > { %736 = vst.msk [vmem:[#allocation2] sm:$0xff] %vm735_vm0, %v734_v0 }
  0x44 PF: > { %vm740_vm1 = vcmask 261120   ;;  %v1971_v3 = vmov 32.0   ;;  %v781_v15 = vld [vmem:[%s2165_s22 + $0x18] sm:$0xff]  ;;  %v780_v16 = vld [vmem:[%s2165_s22 + $0x10] sm:$0xff]  ;;  %v779_v17 = vld [vmem:[%s2165_s22 + $0x8] sm:$0xff]  ;;  %s2471_s20 = scalar_lea.vmem %s2409_s2, %s2145_s19  ;;  %s2472_s26 = sld [smem:[#allocation24_spill]]  ;;  %v927_v46 = vlaneseq }
  0x45   : > { %1840 = vrcp.f32 %v1971_v3  ;;  %801 = vmatpush.msra.mxu0 %v781_v15  ;;  %v778_v18 = vld [vmem:[%s2165_s22] sm:$0xff]  ;;  %s2474_s0 = scalar_lea.vmem %s2412_s5, %s2145_s19  ;;  %s1972_s25 = smov 112   ;;  %vm882_vm6 = vcmask 130048   ;;  %vm936_vm8 = vcmask 64512  }
  0x46   : > { %v1832_v28 = vld [vmem:[%s2471_s20] ss:$0 sm:$0xff]  ;;  %s1973_s17 = smov 96   ;;  %v928_v47 = vshrl.u32 %v927_v46, 7  ;;  %v930_v48 = vand.u32 127, %v927_v46  ;;  %s1974_s24 = smov 64  }
  0x47   : > { %802 = vmatpush.msra.mxu0 %v780_v16  ;;  %v1834_v34 = vld [vmem:[%s2474_s0] ss:$0 sm:$0xff]  ;;  %s2475_s14 = sld [smem:[#allocation21_spill]]  ;;  %s1977_s3 = smov 16  }
  0x48   : > { %vm931_vm7 = vcmp.le.s32.totalorder %v930_v48, %v928_v47  ;;  %v1976_v48 = vmov 1934713408   ;;  %s2476_s22 = scalar_lea.vmem %s2414_s7, %s2145_s19  ;;  %p1727_p1 = scmp.ne.s32.totalorder %s1952_s30, 1 }
  0x49   : > { %803 = vmatpush.msra.mxu0 %v779_v17 }
  0x4a   : > { %v2212_v1 = vld [vmem:[#allocation2] sm:$0xff]  ;;  %s2473_s18 = scalar_lea.vmem %s2472_s26, %s2145_s19  ;;  %s2477_s26 = scalar_lea.vmem %s2415_s8, %s2145_s19 }
  0x4b   : > { %v741_v2 = vsel %vm740_vm1, %v2212_v1, 0.0  ;;  %v1841_v4 = vpop.eup %1840  ;;  %804 = vmatpush.msra.mxu0 %v778_v18  ;;  %v1833_v31 = vld [vmem:[%s2473_s18] ss:$0 sm:$0xff] }
  0x4c   : > { %742 = vadd.xlane.f32.xlu0 %v741_v2  ;;  %v745_v5 = vmul.f32 32.0, %v1841_v4  ;;  %vm749_vm2 = vweird.f32 %v1841_v4 }
  0x4d   : > { %v1279_v47 = vld [vmem:[%s2475_s14] sm:$0xff] }
  0x4e   : > { %v746_v6 = vsub.f32 1.0, %v745_v5 }
  0x50   : > { %v747_v7 = vmul.f32 %v1841_v4, %v746_v6 }
  0x52   : > { %v748_v8 = vadd.f32 %v1841_v4, %v747_v7 }
  0x54   : > { %v2216_v9 = vsel %vm749_vm2, %v1841_v4, %v748_v8  ;;  %vm1184_vm2 = vcmask 1047556  }
  0xbf   : > { %v743_v10 = vpop.xlane.xlu0 %742 }
  0xc0   : > { %v751_v11 = vmul.f32 %v2216_v9, %v743_v10 }
  0xc2   : > { %v752_v12 = vsub.f32 %v2212_v1, %v751_v11 }
  0xc4   : > { %v753_v13 = vmul.f32 %v752_v12, %v752_v12 }
  0xc6   : > { %v754_v14 = vsel %vm740_vm1, %v753_v13, 0.0 }
  0xc7   : > { %755 = vadd.xlane.f32.xlu0 %v754_v14 }
 0x13a   : > { %v756_v19 = vpop.xlane.xlu0 %755 }
 0x13b   : > { %v757_v20 = vmul.f32 %v756_v19, %v2216_v9 }
 0x13d   : > { %v758_v21 = vadd.f32 1e-05, %v757_v20 }
 0x13f   : > { %1842 = vrsqrt.f32 %v758_v21  ;;  %vm765_vm4 = vweird.f32 %v758_v21 }
 0x145   : > { %v1843_v22 = vpop.eup %1842 }
 0x146   : > { %v760_v23 = vmul.f32 %v1843_v22, %v758_v21  ;;  %vm766_vm3 = vweird.f32 %v1843_v22 }
 0x147   : > { %vm767_vm5 = vmor %vm765_vm4, %vm766_vm3 }
 0x148   : > { %v761_v24 = vmul.f32 %v1843_v22, %v760_v23 }
 0x14a   : > { %v762_v25 = vmul.f32 0.5, %v761_v24 }
 0x14c   : > { %v763_v26 = vsub.f32 1.5, %v762_v25 }
 0x14e   : > { %v764_v27 = vmul.f32 %v1843_v22, %v763_v26 }
 0x150   : > { %v768_v29 = vsel %vm767_vm5, %v1843_v22, %v764_v27 }
 0x151   : > { %v769_v30 = vmul.f32 %v768_v29, %v752_v12 }
 0x153   : > { %v773_v32 = vmul.f32 %v1832_v28, %v769_v30 }
 0x155   : > { %v777_v33 = vadd.f32 %v1833_v31, %v773_v32 }
 0x157   : > { %1715 = vmatmul.msk.f32.vlgmr.msra.gmra.mxu0 %vm740_vm1, %v777_v33 }
 0x1d4   : > { %v806_v35 = vpop.f32.mrf.mxu0 }
 0x1d5   : > { %v807_v36 = vadd.f32 %v1834_v34, %v806_v35 }
 0x1d7   : > { %810 = vrot.lane.b32.xlu1 %v807_v36, %s1972_s25  ;;  %s2479_s25 = sld [smem:[#allocation20_spill]] (!%p1727_p1) }
 0x249   : > { %v811_v37 = vpop.permute.xlu1 %810 }
 0x24a   : > { %v1815_v38 = vpack.i.bf16 %v811_v37, %v807_v36 }
 0x24c   : > { %1816 = vrot.lane.b32.xlu1 %v1815_v38, %s1973_s17  ;;  %s1443_s17 = scalar_lea.vmem (!%p1727_p1), [#allocation2], %s2479_s25 }
 0x2be   : > { %v1817_v39 = vpop.permute.xlu1 %1816 }
 0x2bf   : > { %1821 = vxpose.xlu2.b32.start.end [1/1] (short) (narrow) %v1817_v39, 16 }
 0x358   : > { %v1822_v40 = vpop.trf.xlu2 }
 0x359   : > { %v1823_v44 = vunpack.i.l.bf16 %v1822_v40  ;;  %v1826_v45 = vunpack.i.h.bf16 %v1822_v40 }
 0x360   : > { %v1827_v41 = vpop.trf.xlu2 }
 0x361   : > { %v1828_v42 = vunpack.i.l.bf16 %v1827_v41  ;;  %v1831_v43 = vunpack.i.h.bf16 %v1827_v41 }
 0x363   : > { %899 = vmatpush.msra.mxu1 %v1828_v42  ;;  %921 = vmatpush.msra.mxu2 %v1831_v43  ;;  %v1282_v42 = vld [vmem:[%s2475_s14 + $0x18] sm:$0xff]  ;;  %v1281_v43 = vld [vmem:[%s2475_s14 + $0x10] sm:$0xff] }
 0x365   : > { %900 = vmatpush.msra.mxu1 %v1823_v44  ;;  %922 = vmatpush.msra.mxu2 %v1826_v45  ;;  %v1280_v44 = vld [vmem:[%s2475_s14 + $0x8] sm:$0xff] }
 0x366   : > { %1716 = vmatmul.msk.f32.vlgmr.msra.gmra.mxu1 %vm882_vm6, %v807_v36  ;;  %1717 = vmatmul.msk.f32.vlgmr.msra.gmra.mxu2 %vm882_vm6, %v811_v37 }
 0x3e3   : > { %v902_v49 = vpop.f32.mrf.mxu1 }
 0x3e4   : > { %v934_v50 = vsel %vm931_vm7, %v902_v49, -1e+30  ;;  %v1209_v49 = vunpack.c.l.s4 %v1976_v48  ;;  %v1346_v48 = vld [vmem:[%s2191_s27 + $0x10] sm:$0xff] }
 0x3e5   : > { %v937_v51 = vsel %vm936_vm8, %v934_v50, -inf }
 0x3e6   : > { %938 = vmax.xlane.f32.xlu2 %v937_v51 }
 0x3e9   : > { %v924_v52 = vpop.f32.mrf.mxu2 }
 0x3ea   : > { %v935_v53 = vsel %vm931_vm7, %v924_v52, -1e+30  ;;  %v1210_v52 = vunpack.c.0.s8 %v1209_v49  ;;  %v1345_v49 = vld [vmem:[%s2191_s27 + $0x8] sm:$0xff] }
 0x3eb   : > { %v940_v54 = vsel %vm936_vm8, %v935_v53, -inf }
 0x3ec   : > { %941 = vmax.xlane.f32.xlu0 %v940_v54 }
 0x400   : > { %985 = vrot.lane.b32.xlu0 %v807_v36, %s1974_s24 }
 0x459   : > { %v939_v55 = vpop.xlane.xlu2 %938 }
 0x45a   : > { %v943_v56 = vsub.f32 %v934_v50, %v939_v55 }
 0x45c   : > { %v945_v57 = vmul.f32 1.442695, %v943_v56 }
 0x45e   : > { %1844 = vpow2.f32 %v945_v57 }
 0x45f   : > { %v942_v58 = vpop.xlane.xlu0 %941 }
 0x460   : > { %v944_v59 = vsub.f32 %v935_v53, %v942_v58 }
 0x462   : > { %v947_v60 = vmul.f32 1.442695, %v944_v59 }
 0x464   : > { %v1845_v61 = vpop.eup %1844  ;;  %1846 = vpow2.f32 %v947_v60 }
 0x465   : > { %v949_v62 = vsel %vm936_vm8, %v1845_v61, 0.0 }
 0x466   : > { %950 = vadd.xlane.f32.xlu1 %v949_v62 }
 0x46a   : > { %v1847_v63 = vpop.eup %1846 }
 0x46b   : > { %v952_v0 = vsel %vm936_vm8, %v1847_v63, 0.0 }
 0x46c   : > { %953 = vadd.xlane.f32.xlu0 %v952_v0 }
 0x472   : > { %v986_v2 = vpop.permute.xlu0 %985 }
 0x47f   : > { %987 = vrot.lane.b32.xlu1 %v811_v37, %s1974_s24  ;;  %v1975_v37 = vmov 1983009808   ;;  %s2480_s24 = sld [smem:[#allocation30_spill]] (!%p1727_p1) }
 0x480   : > { %v1187_v38 = vunpack.c.l.s4 %v1975_v37  ;;  %v1835_v37 = vld [vmem:[%s2476_s22] ss:$0 sm:$0xff] }
 0x482   : > { %v1188_v40 = vunpack.c.0.s8 %v1187_v38 }
 0x4b4   : > { %991 = vxpose.xlu1.b32.start.end [1/1] (short) (narrow) %v986_v2, 16 }
 0x4d9   : > { %v951_v3 = vpop.xlane.xlu1 %950 }
 0x4da   : > { %1848 = vrcp.f32 %v951_v3  ;;  %v966_v8 = vand.u32 2147483648, %v951_v3  ;;  %v964_v11 = vand.u32 2147483647, %v951_v3  ;;  %vm960_vm10 = vweird.f32 %v951_v3 }
 0x4dc   : > { %v967_v15 = vor.u32 1.1754944e-38, %v966_v8  ;;  %vm965_vm12 = vcmp.eq.f32.partialorder %v964_v11, 8.507059e+37 }
 0x4df   : > { %v954_v4 = vpop.xlane.xlu0 %953 }
 0x4e0   : > { %v1849_v5 = vpop.eup %1848  ;;  %1850 = vrcp.f32 %v954_v4  ;;  %v981_v18 = vand.u32 2147483648, %v954_v4  ;;  %v979_v22 = vand.u32 2147483647, %v954_v4  ;;  %vm975_vm14 = vweird.f32 %v954_v4 }
 0x4e1   : > { %v956_v6 = vmul.f32 %v1849_v5, %v951_v3  ;;  %vm961_vm9 = vweird.f32 %v1849_v5 }
 0x4e2   : > { %vm962_vm11 = vmor %vm960_vm10, %vm961_vm9  ;;  %v982_v24 = vor.u32 1.1754944e-38, %v981_v18  ;;  %vm980_vm0 = vcmp.eq.f32.partialorder %v979_v22, 8.507059e+37 }
 0x4e3   : > { %v957_v7 = vsub.f32 1.0, %v956_v6 }
 0x4e5   : > { %v958_v10 = vmul.f32 %v1849_v5, %v957_v7 }
 0x4e6   : > { %v1851_v12 = vpop.eup %1850 }
 0x4e7   : > { %v971_v13 = vmul.f32 %v1851_v12, %v954_v4  ;;  %v959_v14 = vadd.f32 %v1849_v5, %v958_v10  ;;  %vm976_vm13 = vweird.f32 %v1851_v12 }
 0x4e8   : > { %vm977_vm15 = vmor %vm975_vm14, %vm976_vm13 }
 0x4e9   : > { %v972_v16 = vsub.f32 1.0, %v971_v13  ;;  %v963_v17 = vsel %vm962_vm11, %v1849_v5, %v959_v14 }
 0x4ea   : > { %v968_v19 = vsel %vm965_vm12, %v967_v15, %v963_v17 }
 0x4eb   : > { %v973_v20 = vmul.f32 %v1851_v12, %v972_v16  ;;  %v969_v21 = vmul.f32 %v1845_v61, %v968_v19 }
 0x4ed   : > { %1718 = vmatpush.xpose.msk.msrb.mxu2 %vm936_vm8, %v969_v21  ;;  %v974_v23 = vadd.f32 %v1851_v12, %v973_v20 }
 0x4ef   : > { %v978_v25 = vsel %vm977_vm15, %v1851_v12, %v974_v23 }
 0x4f0   : > { %v983_v26 = vsel %vm980_vm0, %v982_v24, %v978_v25 }
 0x4f1   : > { %v988_v27 = vpop.permute.xlu1 %987  ;;  %v984_v28 = vmul.f32 %v1847_v63, %v983_v26  ;;  %1298 = vmatpush.msra.mxu2 %v1282_v42 }
 0x4f2   : > { %1023 = vxpose.xlu0.b32.start.end [1/1] (short) (narrow) %v988_v27, 16 }
 0x4f3   : > { %1721 = vmatpush.xpose.msk.msrb.mxu1 %vm936_vm8, %v984_v28  ;;  %1299 = vmatpush.msra.mxu2 %v1281_v43 }
 0x4f5   : > { %1300 = vmatpush.msra.mxu2 %v1280_v44 }
 0x4f7   : > { %1301 = vmatpush.msra.mxu2 %v1279_v47  ;;  %v1347_v47 = vld [vmem:[%s2191_s27 + $0x18] sm:$0xff] }
 0x4f8   : > { %1367 = vmatpush.msrb.mxu0 %v1347_v47 }
 0x4fa   : > { %1368 = vmatpush.msrb.mxu0 %v1346_v48 }
 0x4fc   : > { %1369 = vmatpush.msrb.mxu0 %v1345_v49 }
 0x558   : > { %v1007_v29 = vpop.trf.xlu1 }
 0x559   : > { %1719 = vmatmul.msk.f32.vlgmr.msrb.gmra.mxu2 %vm936_vm8, %v1007_v29 }
 0x560   : > { %v1008_v30 = vpop.trf.xlu1 }
 0x561   : > { %1720 = vmatmul.msk.f32.gmra.mxu2 %vm936_vm8, %v1008_v30 }
 0x596   : > { %v1039_v31 = vpop.trf.xlu0 }
 0x597   : > { %1722 = vmatmul.msk.f32.vlgmr.msrb.gmra.mxu1 %vm936_vm8, %v1039_v31 }
 0x59e   : > { %v1040_v32 = vpop.trf.xlu0 }
 0x59f   : > { %1723 = vmatmul.msk.f32.gmra.mxu1 %vm936_vm8, %v1040_v32 }
 0x5dc   : > { %v1081_v33 = vpop.f32.mrf.mxu2 }
 0x5dd   : > { %1119 = vxpose.xlu0.b32.start [1/2] (short) (narrow) %v1081_v33, 8 }
 0x5e4   : > { %v1084_v34 = vpop.f32.mrf.mxu2 }
 0x5e5   : > { %1120 = vxpose.xlu0.b32.end [2/2] (short) (narrow) %v1084_v34, 8 }
 0x614   : > { %v1113_v35 = vpop.f32.mrf.mxu1 }
 0x615   : > { %1151 = vxpose.xlu2.b32.start [1/2] (short) (narrow) %v1113_v35, 8 }
 0x61c   : > { %v1116_v36 = vpop.f32.mrf.mxu1 }
 0x61d   : > { %1152 = vxpose.xlu2.b32.end [2/2] (short) (narrow) %v1116_v36, 8 }
 0x681   : > { %v1135_v39 = vpop.trf.xlu0 }
 0x682   : > { %v1183_v41 = vrot.slane %v1135_v39, 4  ;;  %v1189_v46 = vperm.slane %v1135_v39, %v1188_v40 }
 0x684   : > { %v1185_v45 = vsel %vm1184_vm2, 0.0, %v1183_v41  ;;  %v1206_v51 = vrot.slane %v1189_v46, 4 }
 0x685   : > { %v1193_v50 = vperm.slane %v1185_v45, %v1188_v40 }
 0x687   : > { %v1218_v56 = vrot.slane %v1193_v50, 4 }
 0x6ae   : > { %v1167_v53 = vpop.trf.xlu2 }
 0x6af   : > { %v1194_v54 = vrot.slane %v1167_v53, 4  ;;  %v1199_v55 = vperm.slane %v1167_v53, %v1188_v40 }
 0x6b1   : > { %v1195_v57 = vsel %vm1184_vm2, 0.0, %v1194_v54  ;;  %v1204_v58 = vrot.slane %v1199_v55, 4  ;;  %v1207_v59 = vsel %vm1184_vm2, %v1199_v55, %v1206_v51 }
 0x6b2   : > { %v1203_v60 = vperm.slane %v1195_v57, %v1188_v40  ;;  %v1215_v61 = vperm.slane %v1207_v59, %v1210_v52  ;;  %v1836_v59 = vld [vmem:[%s2477_s26] ss:$0 sm:$0xff]  ;;  %s2481_s26 = sld [smem:[#allocation28_spill]] (!%p1727_p1) }
 0x6b3   : > { %v1205_v62 = vsel %vm1184_vm2, %v1204_v58, %v1189_v46 }
 0x6b4   : > { %v1211_v63 = vperm.slane %v1205_v62, %v1210_v52  ;;  %v1216_v0 = vrot.slane %v1203_v60, 4  ;;  %v1219_v2 = vsel %vm1184_vm2, %v1203_v60, %v1218_v56  ;;  %v1230_v3 = vrot.slane %v1215_v61, 4  ;;  %v1837_v62 = vld [vmem:[%s712_s4] ss:$0 sm:$0xff]  ;;  %s2482_s4 = sld [smem:[#allocation29_spill]] (!%p1727_p1) }
 0x6b5   : > { %v1227_v4 = vperm.slane %v1219_v2, %v1210_v52  ;;  %v1411_v2 = vld [vmem:[%s2205_s28 + $0x78] sm:$0xff] }
 0x6b6   : > { %v1217_v5 = vsel %vm1184_vm2, %v1216_v0, %v1193_v50  ;;  %v1228_v6 = vrot.slane %v1211_v63, 4  ;;  %v1231_v7 = vsel %vm1184_vm2, 0.0, %v1230_v3  ;;  %v1236_v15 = vsel %vm1184_vm2, %v1230_v3, %v1211_v63  ;;  %1412 = vmatpush.msra.mxu3 %v1411_v2  ;;  %v1410_v3 = vld [vmem:[%s2205_s28 + $0x70] sm:$0xff] }
 0x6b7   : > { %v1223_v8 = vperm.slane %v1217_v5, %v1210_v52  ;;  %v1234_v10 = vrot.slane %v1227_v4, 4  ;;  %v1241_v11 = vrot.slane %v1231_v7, 4  ;;  %v1240_v20 = vperm.slane %v1236_v15, %v1188_v40  ;;  %v1409_v4 = vld [vmem:[%s2205_s28 + $0x68] sm:$0xff]  ;;  %v1408_v5 = vld [vmem:[%s2205_s28 + $0x60] sm:$0xff]  ;;  %v1406_v7 = vld [vmem:[%s2205_s28 + $0x50] sm:$0xff] }
 0x6b8   : > { %v1229_v12 = vsel %vm1184_vm2, 0.0, %v1228_v6  ;;  %1413 = vmatpush.msra.mxu3 %v1410_v3  ;;  %v1407_v6 = vld [vmem:[%s2205_s28 + $0x58] sm:$0xff] }
 0x6b9   : > { %v1232_v13 = vrot.slane %v1223_v8, 4  ;;  %v1235_v14 = vsel %vm1184_vm2, 0.0, %v1234_v10  ;;  %v1242_v16 = vsel %vm1184_vm2, %v1241_v11, %v1229_v12  ;;  %v1247_v21 = vsel %vm1184_vm2, %v1234_v10, %v1223_v8  ;;  %v1405_v8 = vld [vmem:[%s2205_s28 + $0x48] sm:$0xff]  ;;  %v1404_v10 = vld [vmem:[%s2205_s28 + $0x40] sm:$0xff]  ;;  %v1403_v11 = vld [vmem:[%s2205_s28 + $0x38] sm:$0xff] }
 0x6ba   : > { %v1252_v17 = vrot.slane %v1235_v14, 4  ;;  %v1246_v18 = vperm.slane %v1242_v16, %v1188_v40  ;;  %v1251_v26 = vperm.slane %v1247_v21, %v1188_v40  ;;  %1414 = vmatpush.msra.mxu3 %v1409_v4  ;;  %v1402_v12 = vld [vmem:[%s2205_s28 + $0x30] sm:$0xff]  ;;  %v1400_v14 = vld [vmem:[%s2205_s28 + $0x20] sm:$0xff]  ;;  %v1399_v15 = vld [vmem:[%s2205_s28 + $0x18] sm:$0xff] }
 0x6bb   : > { %v1233_v19 = vsel %vm1184_vm2, 0.0, %v1232_v13  ;;  %v1401_v13 = vld [vmem:[%s2205_s28 + $0x28] sm:$0xff]  ;;  %v1398_v16 = vld [vmem:[%s2205_s28 + $0x10] sm:$0xff] }
 0x6bc   : > { %v1253_v22 = vsel %vm1184_vm2, %v1252_v17, %v1233_v19  ;;  %v1258_v23 = vrot.slane %v1246_v18, 4  ;;  %1415 = vmatpush.msra.mxu3 %v1408_v5  ;;  %v1838_v17 = vld [vmem:[%s720_s6] ss:$0 sm:$0xff]  ;;  %v1397_v18 = vld [vmem:[%s2205_s28 + $0x8] sm:$0xff] }
 0x6bd   : > { %v1257_v24 = vperm.slane %v1253_v22, %v1188_v40  ;;  %v1396_v19 = vld [vmem:[%s2205_s28] sm:$0xff] }
 0x6be   : > { %v1259_v25 = vsel %vm1184_vm2, %v1258_v23, %v1240_v20  ;;  %1416 = vmatpush.msra.mxu3 %v1407_v6 }
 0x6bf   : > { %v1263_v27 = vperm.slane %v1259_v25, %v1210_v52  ;;  %v1264_v28 = vrot.slane %v1257_v24, 4 }
 0x6c0   : > { %1417 = vmatpush.msra.mxu3 %v1406_v7 }
 0x6c1   : > { %v1265_v29 = vsel %vm1184_vm2, %v1264_v28, %v1251_v26  ;;  %v1272_v30 = vrot.slane %v1263_v27, 4 }
 0x6c2   : > { %v1269_v31 = vperm.slane %v1265_v29, %v1210_v52  ;;  %1418 = vmatpush.msra.mxu3 %v1405_v8 }
 0x6c4   : > { %v1273_v32 = vsel %vm1184_vm2, %v1269_v31, %v1272_v30  ;;  %v1270_v33 = vrot.slane %v1269_v31, 4  ;;  %1419 = vmatpush.msra.mxu3 %v1404_v10 }
 0x6c5   : > { %1275 = vrot.lane.b32.xlu1 %v1273_v32, %s1977_s3 }
 0x6c6   : > { %v1271_v34 = vsel %vm1184_vm2, %v1270_v33, %v1263_v27  ;;  %1420 = vmatpush.msra.mxu3 %v1403_v11 }
 0x6c8   : > { %1421 = vmatpush.msra.mxu3 %v1402_v12 }
 0x6ca   : > { %1422 = vmatpush.msra.mxu3 %v1401_v13 }
 0x6cc   : > { %1423 = vmatpush.msra.mxu3 %v1400_v14 }
 0x6ce   : > { %1424 = vmatpush.msra.mxu3 %v1399_v15 }
 0x6d0   : > { %1425 = vmatpush.msra.mxu3 %v1398_v16 }
 0x6d2   : > { %1426 = vmatpush.msra.mxu3 %v1397_v18 }
 0x6d4   : > { %1427 = vmatpush.msra.mxu3 %v1396_v19 }
 0x737   : > { %v1276_v35 = vpop.permute.xlu1 %1275 }
 0x738   : > { %v1278_v36 = vsel %vm882_vm6, %v1271_v34, %v1276_v35 }
 0x739   : > { %1724 = vmatmul.msk.f32.vlgmr.msra.gmra.mxu2 %vm740_vm1, %v1278_v36 }
 0x7bc   : > { %v1303_v38 = vpop.f32.mrf.mxu2 }
 0x7bd   : > { %v1306_v39 = vadd.f32 %v1303_v38, %v2212_v1  ;;  %v1344_v1 = vld [vmem:[%s2191_s27] sm:$0xff] }
 0x7be   : > { %1370 = vmatpush.msrb.mxu0 %v1344_v1 }
 0x7bf   : > { %v2284_v40 = vadd.f32 %v1835_v37, %v1306_v39  ;;  %v1839_v37 = vld [vmem:[%s728_s11] ss:$0 sm:$0xff] }
 0x7c1   : > { %v1314_v41 = vsel %vm740_vm1, %v2284_v40, 0.0 }
 0x7c2   : > { %1315 = vadd.xlane.f32.xlu0 %v1314_v41 }
 0x835   : > { %v1316_v42 = vpop.xlane.xlu0 %1315 }
 0x836   : > { %v1317_v43 = vmul.f32 %v1316_v42, %v2216_v9 }
 0x838   : > { %v1318_v44 = vsub.f32 %v2284_v40, %v1317_v43 }
 0x83a   : > { %v1319_v45 = vmul.f32 %v1318_v44, %v1318_v44 }
 0x83c   : > { %v1320_v46 = vsel %vm740_vm1, %v1319_v45, 0.0 }
 0x83d   : > { %1321 = vadd.xlane.f32.xlu2 %v1320_v46 }
 0x8b0   : > { %v1322_v50 = vpop.xlane.xlu2 %1321 }
 0x8b1   : > { %v1323_v51 = vmul.f32 %v1322_v50, %v2216_v9 }
 0x8b3   : > { %v1324_v52 = vadd.f32 1e-05, %v1323_v51 }
 0x8b5   : > { %1852 = vrsqrt.f32 %v1324_v52  ;;  %vm1331_vm4 = vweird.f32 %v1324_v52 }
 0x8bb   : > { %v1853_v53 = vpop.eup %1852 }
 0x8bc   : > { %v1326_v54 = vmul.f32 %v1853_v53, %v1324_v52  ;;  %vm1332_vm3 = vweird.f32 %v1853_v53 }
 0x8bd   : > { %vm1333_vm5 = vmor %vm1331_vm4, %vm1332_vm3 }
 0x8be   : > { %v1327_v55 = vmul.f32 %v1853_v53, %v1326_v54 }
 0x8c0   : > { %v1328_v56 = vmul.f32 0.5, %v1327_v55 }
 0x8c2   : > { %v1329_v57 = vsub.f32 1.5, %v1328_v56 }
 0x8c4   : > { %v1330_v58 = vmul.f32 %v1853_v53, %v1329_v57 }
 0x8c6   : > { %v1334_v60 = vsel %vm1333_vm5, %v1853_v53, %v1330_v58 }
 0x8c7   : > { %v1335_v61 = vmul.f32 %v1334_v60, %v1318_v44 }
 0x8c9   : > { %v1339_v63 = vmul.f32 %v1836_v59, %v1335_v61 }
 0x8cb   : > { %v1343_v0 = vadd.f32 %v1837_v62, %v1339_v63 }
 0x8cd   : > { %1725 = vmatmul.msk.f32.vlgmr.msrb.gmra.mxu0 %vm740_vm1, %v1343_v0 }
 0x94a   : > { %v1372_v20 = vpop.f32.mrf.mxu0 }
 0x94b   : > { %v1373_v21 = vadd.f32 %v1838_v17, %v1372_v20 }
 0x94d   : > { %v1726_v22 = vmul.f32 -1.702, %v1373_v21 }
 0x94f   : > { %v1377_v23 = vmul.f32 1.442695, %v1726_v22 }
 0x951   : > { %1854 = vpow2.f32 %v1377_v23 }
 0x957   : > { %v1855_v24 = vpop.eup %1854 }
 0x958   : > { %v1379_v25 = vadd.f32 1.0, %v1855_v24 }
 0x95a   : > { %1856 = vrcp.f32 %v1379_v25  ;;  %v1391_v29 = vand.u32 2147483648, %v1379_v25  ;;  %v1389_v31 = vand.u32 2147483647, %v1379_v25  ;;  %vm1385_vm7 = vweird.f32 %v1379_v25 }
 0x95c   : > { %v1392_v33 = vor.u32 1.1754944e-38, %v1391_v29  ;;  %vm1390_vm9 = vcmp.eq.f32.partialorder %v1389_v31, 8.507059e+37 }
 0x960   : > { %v1857_v26 = vpop.eup %1856 }
 0x961   : > { %v1381_v27 = vmul.f32 %v1857_v26, %v1379_v25  ;;  %vm1386_vm6 = vweird.f32 %v1857_v26 }
 0x962   : > { %vm1387_vm8 = vmor %vm1385_vm7, %vm1386_vm6 }
 0x963   : > { %v1382_v28 = vsub.f32 1.0, %v1381_v27 }
 0x965   : > { %v1383_v30 = vmul.f32 %v1857_v26, %v1382_v28 }
 0x967   : > { %v1384_v32 = vadd.f32 %v1857_v26, %v1383_v30 }
 0x969   : > { %v1388_v34 = vsel %vm1387_vm8, %v1857_v26, %v1384_v32 }
 0x96a   : > { %v1393_v35 = vsel %vm1390_vm9, %v1392_v33, %v1388_v34 }
 0x96b   : > { %v1395_v36 = vmul.f32 %v1393_v35, %v1373_v21 }
 0x96d   : > { %1428 = vmatmul.f32.vlgmr.msra.gmra.mxu3 %v1395_v36 }
 0x9f0   : > { %v1429_v38 = vpop.f32.mrf.mxu3 }
 0x9f1   : > { %v1432_v39 = vadd.f32 %v1429_v38, %v2284_v40  ;;  %1442 = sbr.rel (%p1727_p1) target bundleno = 2952 (0xb88), region = 92 }
 0x9f3   : > { %v1437_v41 = vadd.f32 %v1839_v37, %v1432_v39 }
 0x9f5   : > { %1438 = vst.msk [vmem:[#allocation2] sm:$0xff] %vm740_vm1, %v1437_v41 }
 0x9f6   : > { %vm1447_vm10 = vcmask 253952   ;;  %v1475_v48 = vld [vmem:[%s2480_s24 + $0x18] sm:$0xff]  ;;  %v1474_v49 = vld [vmem:[%s2480_s24 + $0x10] sm:$0xff]  ;;  %v1473_v1 = vld [vmem:[%s2480_s24 + $0x8] sm:$0xff] }
 0x9f7   : > { %1491 = vmatpush.msra.mxu0 %v1475_v48  ;;  %v1472_v50 = vld [vmem:[%s2480_s24] sm:$0xff] }
 0x9f8   : > { %v1445_v60 = vld [vmem:[%s2481_s26] sm:$0x1] }
 0x9f9   : > { %1492 = vmatpush.msra.mxu0 %v1474_v49 }
 0x9fb   : > { %1493 = vmatpush.msra.mxu0 %v1473_v1 }
 0x9fc   : > { %v1444_v42 = vld [vmem:[%s1443_s17] sm:$0x1] }
 0x9fd   : > { %v1448_v43 = vsel %vm1447_vm10, %v1444_v42, 0.0  ;;  %1494 = vmatpush.msra.mxu0 %v1472_v50 }
 0x9fe   : > { %1449 = vadd.xlane.f32.xlu0 %v1448_v43 }
 0xa71   : > { %v1450_v44 = vpop.xlane.xlu0 %1449 }
 0xa72   : > { %v1451_v45 = vmul.f32 %v1450_v44, %v2216_v9 }
 0xa74   : > { %v1452_v46 = vsub.f32 %v1444_v42, %v1451_v45 }
 0xa76   : > { %v1453_v47 = vmul.f32 %v1452_v46, %v1452_v46 }
 0xa78   : > { %v1454_v40 = vsel %vm1447_vm10, %v1453_v47, 0.0 }
 0xa79   : > { %1455 = vadd.xlane.f32.xlu0 %v1454_v40 }
 0xaec   : > { %v1456_v51 = vpop.xlane.xlu0 %1455 }
 0xaed   : > { %v1457_v52 = vmul.f32 %v1456_v51, %v2216_v9  ;;  %v1446_v9 = vld [vmem:[%s2482_s4] sm:$0x1] }
 0xaef   : > { %v1458_v53 = vadd.f32 1e-05, %v1457_v52 }
 0xaf1   : > { %1858 = vrsqrt.f32 %v1458_v53  ;;  %vm1465_vm12 = vweird.f32 %v1458_v53 }
 0xaf7   : > { %v1859_v54 = vpop.eup %1858 }
 0xaf8   : > { %v1460_v55 = vmul.f32 %v1859_v54, %v1458_v53  ;;  %vm1466_vm11 = vweird.f32 %v1859_v54 }
 0xaf9   : > { %vm1467_vm13 = vmor %vm1465_vm12, %vm1466_vm11 }
 0xafa   : > { %v1461_v56 = vmul.f32 %v1859_v54, %v1460_v55 }
 0xafc   : > { %v1462_v57 = vmul.f32 0.5, %v1461_v56 }
 0xafe   : > { %v1463_v58 = vsub.f32 1.5, %v1462_v57 }
 0xb00   : > { %v1464_v59 = vmul.f32 %v1859_v54, %v1463_v58 }
 0xb02   : > { %v1468_v61 = vsel %vm1467_vm13, %v1859_v54, %v1464_v59 }
 0xb03   : > { %v1469_v62 = vmul.f32 %v1468_v61, %v1452_v46 }
 0xb05   : > { %v1470_v63 = vmul.f32 %v1469_v62, %v1445_v60 }
 0xb07   : > { %v1471_v0 = vadd.f32 %v1470_v63, %v1446_v9 }
 0xb09   : > { %1728 = vmatmul.msk.f32.vlgmr.msra.gmra.mxu0 %vm740_vm1, %v1471_v0 }
 0xb86   : > { %v1496_v2 = vpop.f32.mrf.mxu0 }
 0xb87   : > { %1499 = vst.msk [vmem:[%s2209_s16] sm:$0x1] %vm1447_vm10, %v1496_v2 }
 0xb88 PF: > { %s2483_s1 = sld [smem:[#allocation11_spill]]  ;;  %s1511_s11 = sshll.u32 %s2209_s16, 4  ;;  %s1512_s11 = int_to_ptr.vmem [resolvable:$true] %s1511_s11 }
 0xb89   : > { %s2484_s28 = sld [smem:[#allocation31_spill]]  ;;  %s2487_s14 = sand.u32 1, %s1944_s29  }
 0xb8a   : > { %s1501_s3 = scalar_lea.sflag [#allocation6], %s2487_s14 }
 0xb8f   : > { %s2485_s25 = smov %s2484_s28  ;;  %s1509_s19 = scalar_lea.hbm %s2484_s28, %s2483_s1 }
 0xb90   : > { %s1513_s30 = sshll.u32 %s1509_s19, 4  ;;  %s1892_s23 = scalar_lea.hbm %s2485_s25, 2  ;;  %s1514_s30 = int_to_ptr.hbm [resolvable:$true] %s1513_s30 }
 0xb91   : > { %s1886_s15 = sshra.s32 %s1514_s30, 4  ;;  %s1887_s15 = int_to_ptr.hbm [resolvable:$true] %s1886_s15 }
 0xb92   : > { %s1888_s20 = scalar_lea.hbm %s1887_s15, 1  ;;  %p1893_p6 = scmp.lt.s32.totalorder %s1887_s15, %s2485_s25 }
 0xb93   : > { %p1889_p2 = scmp.ne.s32.totalorder %s1887_s15, %s1888_s20  ;;  %p1894_p7 = scmp.lt.s32.totalorder %s1892_s23, %s1888_s20 }
 0xb95   : > { %p1890_p4 = pnand %p1889_p2, %p2120_p3  ;;  %p1895_p8 = por %p1894_p7, %p1893_p6 }
 0xb97   : > { %p1891_p5 = pneg %p1890_p4 }
 0xb99   : > { %p1896_p10 = pnand %p1895_p8, %p1891_p5 }
 0xb9b   : > { %1899 = shalt.err (!%p1896_p10)
}
 0xb9c   : > { %1735 = dma.vmem_to_hbm [thread:$0]  (%p2120_p3), %s1512_s11, 16, %s1514_s30, %s1501_s3  }
 0xb9d PF: > { %s2488_s16 = sld [smem:[#allocation14_spill]] }
 0xb9e   : > { %s2489_s21 = sld [smem:[#allocation9_spill]] }
 0xba3   : > { %p1741_p11 = scmp.ge.s32.totalorder %s2488_s16, 2 }
 0xba4   : > { %s1525_s1 = sand.u32 1, %s2489_s21  }
 0xba5   : > { %p1738_p12 = pnand %p1741_p11, %p2130_p9  ;;  %s1526_s0 = scalar_lea.sflag [#allocation6], %s1525_s1 }
 0xba7   : > { %p1739_p13 = pneg %p1738_p12 }
 0xba9   : > { %1935 = dma.done.wait (%p1739_p13), %s1526_s0, 16  }
 0xbaa   : > { %1937 = vsyncadd (%p1739_p13), %s1526_s0, 4294967280  ;;  %s38_s11 = sadd.s32 1, %s2488_s16   ;;  %s2491_s6 = sld [smem:[#allocation10_spill]] }
 0xbab   : > { %p35_p0 = scmp.ge.s32.totalorder %s38_s11, 6   ;;  %s2492_s0 = sld [smem:[#allocation19_spill]] }
 0xbac   : > { %s2493_s30 = sld [smem:[#allocation12_spill]]  ;;  %s2497_s28 = smov %s1944_s29 }
 0xbad   : > { %s2494_s18 = sld [smem:[#allocation13_spill]]  ;;  %37 = sbr.rel (!%p35_p0) target bundleno = 27 (0x1b), region = 164 }
 0xbae   : > { %s2495_s19 = sld [smem:[#allocation15_spill]] }
 0xbaf   : > { %s2496_s1 = sld [smem:[#allocation17_spill]] }
 0xbb0   : > { %s2498_s29 = smov %s2491_s6 }
 0xbb2   :  { %1531 = vsyncpa [#allocation6], 1 }
 0xbb3   :  { %1533 = vsyncpa [#allocation6 + $0x1], 1 }

</bundles_post_ra>
